<compile_context>
chip_gen: v7x
topology: tpu7x:2x2x1
jax: 0.10.0
libtpu: 0.0.40
codegen_flags: <defaults>
</compile_context>

<pallas_src>
import functools

import numpy as np
import jax
import jax.numpy as jnp
from jax.experimental import pallas as pl
from jax.experimental.pallas import tpu as pltpu


def cutmix_kernel(idx_ref, inter_ref, mask_ref, x_ref, xp_ref, o_ref):
    # idx_ref  : SMEM int32[B]           batch permutation   (index_maps only)
    # inter_ref: SMEM int32[num_tiles]   tile-intersects-box (index_maps only)
    # mask_ref : VMEM (1, T, 128) int32  1 inside the cut box, 0 outside
    # x_ref / xp_ref / o_ref : VMEM (1, T, 128) data tiles
    del idx_ref, inter_ref
    inside = mask_ref[...] != 0
    # Single vselect per element; exact slice-assign semantics (no 0*NaN
    # leakage from x[index] outside the box).
    o_ref[...] = jnp.where(inside, xp_ref[...], x_ref[...])


def _rand_bbox(size, lam, rng):
    # Literal port of CutMix.rand_bbox (numpy, concrete python ints).
    W = size[2]
    H = size[3]
    cut_rat = np.sqrt(1.0 - lam)
    cut_w = int(W * cut_rat)
    cut_h = int(H * cut_rat)
    cx = int(rng.randint(W))
    cy = int(rng.randint(H))
    bbx1 = int(np.clip(cx - cut_w // 2, 0, W))
    bby1 = int(np.clip(cy - cut_h // 2, 0, H))
    bbx2 = int(np.clip(cx + cut_w // 2, 0, W))
    bby2 = int(np.clip(cy + cut_h // 2, 0, H))
    return bbx1, bby1, bbx2, bby2


def _plan(shape, dtype, force_s_tile=None):
    """Pick the flat-row tile (multiple of the sublane pack, or the full S
    axis) and a matching vmem_limit_bytes from an honest double-buffered
    footprint: 2 buffers x (x + x[index] + out + int32 mask) per tile."""
    B, C, H, W = shape
    n = C * H * W
    pad = (-n) % 128
    S = (n + pad) // 128
    itemsize = jnp.dtype(dtype).itemsize
    pack = max(8, 32 // itemsize)              # sublane packing: f32->8, bf16->16

    try:
        phys = int(pltpu.get_tpu_info().vmem_capacity_bytes)
    except Exception:
        phys = 64 << 20                        # v7x per-TC worst case

    budget = min(32 << 20, phys // 2)          # total double-buffered footprint
    per_row = 2 * 128 * (3 * itemsize + 4)     # bytes per S-row, all streams, x2 bufs
    max_rows = max(pack, budget // per_row)

    if max_rows >= S:
        s_tile = S                             # full axis (exempt from pack rule)
    else:
        s_tile = max(pack, (max_rows // pack) * pack)

    if force_s_tile is not None:               # test hook
        s_tile = min(int(force_s_tile), S)

    footprint = 2 * s_tile * 128 * (3 * itemsize + 4)
    vmem_limit = int(min(phys * 3 // 4, max(footprint + (8 << 20), 32 << 20)))
    return s_tile, vmem_limit


@functools.partial(jax.jit, static_argnames=("s_tile", "vmem_limit"))
def _cutmix_apply(x, index, bbox, *, s_tile, vmem_limit):
    """Device side of CutMix: build the flat box mask, run the Pallas kernel.
    bbox is a (4,) int32 device array so the same executable is reused across
    different boxes / permutations (only shapes trigger recompiles)."""
    B, C, H, W = x.shape
    n = C * H * W
    pad = (-n) % 128
    S = (n + pad) // 128
    num_tiles = pl.cdiv(S, s_tile)
    itemsize = jnp.dtype(x.dtype).itemsize

    bbx1, bby1, bbx2, bby2 = bbox[0], bbox[1], bbox[2], bbox[3]

    # 0/1 box mask over (H, W); bbx* indexes dim -2 and bby* indexes dim -1,
    # exactly like mask[:, :, bbx1:bbx2, bby1:bby2] = 1 in the original.
    h_idx = jnp.arange(H, dtype=jnp.int32)[:, None]
    w_idx = jnp.arange(W, dtype=jnp.int32)[None, :]
    m_hw = ((h_idx >= bbx1) & (h_idx < bbx2) &
            (w_idx >= bby1) & (w_idx < bby2)).astype(jnp.int32)      # (H, W)
    # Replicate over C into the sublane-dense flat layout (O(C*H*W) ints —
    # negligible next to the O(B*C*H*W) mixing, reused across the batch).
    m_flat = jnp.broadcast_to(m_hw[None], (C, H, W)).reshape(n)
    if pad:
        m_flat = jnp.pad(m_flat, (0, pad))
    mask = m_flat.reshape(1, S, 128)

    # Per-tile "intersects the cut box" flag -> drives the x[index] DMA skip.
    # Invariant: inter[t] == 0  =>  mask is all-zero on tile t, so the stale
    # xp buffer selected by the constant (0,0,0) block index is never read.
    row_any = mask.reshape(S, 128).max(axis=1)
    row_any = jnp.pad(row_any, (0, num_tiles * s_tile - S))
    inter = row_any.reshape(num_tiles, s_tile).max(axis=1).astype(jnp.int32)

    xf = x.reshape(B, n)
    if pad:
        # TODO(synk): the pad/unpad copies cost ~2 extra passes when C*H*W is
        # not 128-divisible; a dedicated (B, C, HW) fallback path would avoid
        # them at the cost of sublane waste.
        xf = jnp.pad(xf, ((0, 0), (0, pad)))
    x3 = xf.reshape(B, S, 128)

    grid_spec = pltpu.PrefetchScalarGridSpec(
        num_scalar_prefetch=2,                 # index, inter -> SMEM
        grid=(num_tiles, B),                   # batch fastest: mask DMA reused over B
        in_specs=[
            # flat box mask (shared across batch)
            pl.BlockSpec((1, s_tile, 128), lambda t, b, idx, itr: (0, t, 0)),
            # x[b]
            pl.BlockSpec((1, s_tile, 128), lambda t, b, idx, itr: (b, t, 0)),
            # x[index[b]] — data-dependent block; constant (0,0,0) on tiles
            # fully outside the box so consecutive repeats elide the DMA.
            pl.BlockSpec((1, s_tile, 128),
                         lambda t, b, idx, itr: (idx[b] * itr[t], t * itr[t], 0)),
        ],
        out_specs=pl.BlockSpec((1, s_tile, 128), lambda t, b, idx, itr: (b, t, 0)),
    )

    bytes_accessed = 3 * B * n * itemsize + n * 4

    out3 = pl.pallas_call(
        cutmix_kernel,
        out_shape=jax.ShapeDtypeStruct((B, S, 128), x.dtype),
        grid_spec=grid_spec,
        compiler_params=pltpu.CompilerParams(
            dimension_semantics=("parallel", "parallel"),
            vmem_limit_bytes=int(vmem_limit)),
        cost_estimate=pl.CostEstimate(
            flops=0, transcendentals=0, bytes_accessed=int(bytes_accessed)),
    )(index, inter, mask, x3, x3)

    out = out3.reshape(B, S * 128)
    if pad:
        out = out[:, :n]
    return out.reshape(B, C, H, W)


def cutmix_forward(x, y, alpha=1.0, np_seed=0, perm_key=None, force_s_tile=None):
    """Returns (x_mixed, y, y[index], lam) — same semantics as CutMix.forward —
    plus (index, bbox) for verification."""
    B, C, H, W = x.shape

    rng = np.random.RandomState(np_seed)
    lam = float(rng.beta(alpha, alpha))

    if perm_key is None:
        perm_key = jax.random.PRNGKey(0)
    index = jax.random.permutation(perm_key, B).astype(jnp.int32)

    bbx1, bby1, bbx2, bby2 = _rand_bbox(x.shape, lam, rng)
    bbox = jnp.asarray([bbx1, bby1, bbx2, bby2], dtype=jnp.int32)

    s_tile, vmem_limit = _plan(x.shape, x.dtype, force_s_tile)
    x_mixed = _cutmix_apply(x, index, bbox, s_tile=s_tile, vmem_limit=vmem_limit)

    lam_adj = 1.0 - (bbx2 - bbx1) * (bby2 - bby1) / float(W * H)
    return x_mixed, y, y[index], lam_adj, (index, (bbx1, bby1, bbx2, bby2))


def _reference(x, index, bbox):
    # Pure-numpy reference of the mixing path (for verification).
    bbx1, bby1, bbx2, bby2 = bbox
    xn = np.asarray(x)
    m = np.zeros((1, 1, xn.shape[2], xn.shape[3]), dtype=np.float32)
    m[:, :, bbx1:bbx2, bby1:bby2] = 1.0
    return xn * (1.0 - m) + xn[np.asarray(index), ...] * m


if __name__ == "__main__":
    key = jax.random.PRNGKey(0)
    kx, kperm, kx2, kperm2, kx3, kperm3 = jax.random.split(key, 6)

    # --- test 1: B=2, C=4, 16x16 (C*H*W = 1024 -> S=8, single tile) -------
    B, C, H, W = 2, 4, 16, 16
    x = jax.random.normal(kx, (B, C, H, W), dtype=jnp.float32)
    y = jnp.arange(B, dtype=jnp.int32)
    x_mixed, y_a, y_b, lam, (index, bbox) = cutmix_forward(
        x, y, alpha=1.0, np_seed=0, perm_key=kperm)
    x_mixed = jax.block_until_ready(x_mixed)
    np.testing.assert_allclose(np.asarray(x_mixed), _reference(x, index, bbox),
                               rtol=0, atol=0)
    assert y_a.shape == (B,) and y_b.shape == (B,)
    assert 0.0 <= lam <= 1.0

    # --- test 2: multi-tile + partial trailing tile (S=12, s_tile=8) ------
    B2, C2, H2, W2 = 2, 3, 16, 32
    x2 = jax.random.normal(kx2, (B2, C2, H2, W2), dtype=jnp.float32)
    y2 = jnp.arange(B2, dtype=jnp.int32)
    x2_mixed, _, _, lam2, (index2, bbox2) = cutmix_forward(
        x2, y2, alpha=1.0, np_seed=3, perm_key=kperm2, force_s_tile=8)
    x2_mixed = jax.block_until_ready(x2_mixed)
    np.testing.assert_allclose(np.asarray(x2_mixed), _reference(x2, index2, bbox2),
                               rtol=0, atol=0)
    assert 0.0 <= lam2 <= 1.0

    # --- test 3: non-128-divisible C*H*W (300 -> padded to 384) -----------
    B3, C3, H3, W3 = 2, 3, 10, 10
    x3 = jax.random.normal(kx3, (B3, C3, H3, W3), dtype=jnp.float32)
    y3 = jnp.arange(B3, dtype=jnp.int32)
    x3_mixed, _, _, lam3, (index3, bbox3) = cutmix_forward(
        x3, y3, alpha=1.0, np_seed=7, perm_key=kperm3)
    x3_mixed = jax.block_until_ready(x3_mixed)
    np.testing.assert_allclose(np.asarray(x3_mixed), _reference(x3, index3, bbox3),
                               rtol=0, atol=0)
    assert 0.0 <= lam3 <= 1.0

    print("KERNEL_OK")
</pallas_src>

<mosaic_0001>
module attributes {stable_mosaic.version = 11 : i64} {
  func.func @cutmix_kernel(%arg0: i32, %arg1: i32, %arg2: memref<2xi32, #tpu.memory_space<smem>>, %arg3: memref<1xi32, #tpu.memory_space<smem>>, %arg4: memref<1x8x128xi32, #tpu.memory_space<vmem>>, %arg5: memref<1x8x128xf32, #tpu.memory_space<vmem>>, %arg6: memref<1x8x128xf32, #tpu.memory_space<vmem>>, %arg7: memref<1x8x128xf32, #tpu.memory_space<vmem>>) attributes {dimension_semantics = [#tpu.dimension_semantics<parallel>, #tpu.dimension_semantics<parallel>], iteration_bounds = array<i64: 1, 2>, scalar_prefetch = 2 : i64, scratch_operands = 0 : i64, tpu.core_type = #tpu.core_type<tc>, window_params = [{transform_indices = @transform_0, window_bounds = array<i64: 1, 8, 128>}, {transform_indices = @transform_1, window_bounds = array<i64: 1, 8, 128>}, {transform_indices = @transform_2, window_bounds = array<i64: 1, 8, 128>}, {transform_indices = @transform_3, window_bounds = array<i64: 1, 8, 128>}]} {
    %c0 = arith.constant 0 : index
    %c0_0 = arith.constant 0 : index
    %c0_1 = arith.constant 0 : index
    %0 = vector.load %arg4[%c0, %c0_0, %c0_1] : memref<1x8x128xi32, #tpu.memory_space<vmem>>, vector<1x8x128xi32>
    %c0_i32 = arith.constant 0 : i32
    %1 = vector.broadcast %c0_i32 : i32 to vector<1x8x128xi32>
    %2 = arith.cmpi ne, %0, %1 : vector<1x8x128xi32>
    %c0_2 = arith.constant 0 : index
    %c0_3 = arith.constant 0 : index
    %c0_4 = arith.constant 0 : index
    %3 = vector.load %arg6[%c0_2, %c0_3, %c0_4] : memref<1x8x128xf32, #tpu.memory_space<vmem>>, vector<1x8x128xf32>
    %c0_5 = arith.constant 0 : index
    %c0_6 = arith.constant 0 : index
    %c0_7 = arith.constant 0 : index
    %4 = vector.load %arg5[%c0_5, %c0_6, %c0_7] : memref<1x8x128xf32, #tpu.memory_space<vmem>>, vector<1x8x128xf32>
    %5 = arith.select %2, %3, %4 : vector<1x8x128xi1>, vector<1x8x128xf32>
    %c0_8 = arith.constant 0 : index
    %c0_9 = arith.constant 0 : index
    %c0_10 = arith.constant 0 : index
    %6 = vector.load %arg7[%c0_8, %c0_9, %c0_10] : memref<1x8x128xf32, #tpu.memory_space<vmem>>, vector<1x8x128xf32>
    tpu.vector_store %arg7[%c0_8, %c0_9, %c0_10], %5 {strides = array<i32>} : memref<1x8x128xf32, #tpu.memory_space<vmem>>, vector<1x8x128xf32>,
    return
  }
  func.func @transform_0(%arg0: i32, %arg1: i32, %arg2: memref<2xi32, #tpu.memory_space<smem>>, %arg3: memref<1xi32, #tpu.memory_space<smem>>) -> (i32, i32, i32) {
    %c0_i32 = arith.constant 0 : i32
    %c0_i32_0 = arith.constant 0 : i32
    %c0_i32_1 = arith.constant 0 : i32
    return %c0_i32, %arg0, %c0_i32_0 : i32, i32, i32
  }
  func.func @transform_1(%arg0: i32, %arg1: i32, %arg2: memref<2xi32, #tpu.memory_space<smem>>, %arg3: memref<1xi32, #tpu.memory_space<smem>>) -> (i32, i32, i32) {
    %c0_i32 = arith.constant 0 : i32
    %c0_i32_0 = arith.constant 0 : i32
    return %arg1, %arg0, %c0_i32 : i32, i32, i32
  }
  func.func @transform_2(%arg0: i32, %arg1: i32, %arg2: memref<2xi32, #tpu.memory_space<smem>>, %arg3: memref<1xi32, #tpu.memory_space<smem>>) -> (i32, i32, i32) {
    %0 = arith.index_cast %arg1 : i32 to index
    %1 = memref.load %arg2[%0] : memref<2xi32, #tpu.memory_space<smem>>
    %2 = arith.index_cast %arg0 : i32 to index
    %3 = memref.load %arg3[%2] : memref<1xi32, #tpu.memory_space<smem>>
    %4 = arith.muli %1, %3 : i32
    %5 = arith.index_cast %arg0 : i32 to index
    %6 = memref.load %arg3[%5] : memref<1xi32, #tpu.memory_space<smem>>
    %7 = arith.muli %arg0, %6 : i32
    %c0_i32 = arith.constant 0 : i32
    %c0_i32_0 = arith.constant 0 : i32
    return %4, %7, %c0_i32 : i32, i32, i32
  }
  func.func @transform_3(%arg0: i32, %arg1: i32, %arg2: memref<2xi32, #tpu.memory_space<smem>>, %arg3: memref<1xi32, #tpu.memory_space<smem>>) -> (i32, i32, i32) {
    %c0_i32 = arith.constant 0 : i32
    %c0_i32_0 = arith.constant 0 : i32
    return %arg1, %arg0, %c0_i32 : i32, i32, i32
  }
}

</mosaic_0001>

<bundles_post_ra>
// kernel: _cutmix_apply.1
= control target key start
LH: loop header
LB: loop body
LE: loop exit
PB: predicated region body
PF: predicated region fallthrough
CT: control target
= control target key end

     0   :  { %s537_s0 = inlined_call_operand.vmem [shape: s32[2], index: 0, kind: input, shape index: {}]   ;;  %s538_s1 = inlined_call_operand.<no memory space> [shape: s32[1], index: 1, kind: input, shape index: {}]   ;;  %s539_s2 = inlined_call_operand.vmem [shape: s32[1,8,128], index: 2, kind: input, shape index: {}]   ;;  %s540_s3 = inlined_call_operand.vmem [shape: f32[2,8,128], index: 3, kind: input, shape index: {}, may-alias: {3,4}]   ;;  %s541_s4 = inlined_call_operand.vmem [shape: f32[2,8,128], index: 4, kind: input, shape index: {}, may-alias: {3,4}]   ;;  %s542_s5 = inlined_call_operand.vmem [shape: f32[2,8,128], index: 5, kind: output, shape index: {}]  }
   0x1   :  { %s10_s20 = sshll.u32 %s537_s0, 4  ;;  %14 = sst [smem:[#allocation4]] %s538_s1  ;;  %s11_s20 = int_to_ptr.vmem [resolvable:$true] %s10_s20 }
   0x2   :  { %s426_s23 = scalar_lea.vmem %s11_s20, 16  ;;  %p431_p1 = scmp.lt.s32.totalorder %s11_s20, %s11_s20 }
   0x3   :  { %p427_p0 = scmp.ne.s32.totalorder %s11_s20, %s426_s23  ;;  %p432_p2 = scmp.lt.s32.totalorder %s426_s23, %s426_s23 }
   0x5   :  { %p433_p3 = por %p432_p2, %p431_p1 }
   0x7   :  { %p434_p4 = pnand %p433_p3, %p427_p0 }
   0x9   :  { %437 = shalt.err (!%p434_p4)  }
   0xa   :  { %s464_s24 = smov [#allocation3]  }
   0xb   :  { %13 = dma.vmem_to_smem %s11_s20, 16, %s464_s24, [#allocation2] }
   0xc   :  { %450 = dma.done.wait [#allocation2], 16 }
   0xd   :  { %451 = vsyncadd [#allocation2], 4294967280 }
   0xe   :  { %16 = sfence }
   0xf   :  { %s501_s25 = smov 0   ;;  %s503_s0 = smov 0  }
  0x10   :  { %s505_s26 = smov 0  }
  0x11 LB: > { %s31_s1 = sadd.s32 1, %s458_s0  ;;  %p395_p5 = scmp.ge.s32.totalorder %s462_s26, 1  ;;  %s462_s26 = sphi %s505_s26, %s22_s26   ;;  %s458_s0 = sphi %s503_s0, %s544_s0   ;;  %s454_s25 = sphi %s501_s25, %s543_s25  }
  0x12   : > { %p32_p6 = scmp.ge.s32.totalorder %s31_s1, 2  ;;  %p203_p7 = scmp.lt.s32.totalorder %s462_s26, 3 }
  0x14   : > { %s546_s1 = smov (%p32_p6, %s31_s1), 0  ;;  %p204_p8 = pnand %p395_p5, %p203_p7 }
  0x15   : > { %p250_p9 = scmp.lt.s32.totalorder (!%p204_p8), %s454_s25, 1  ;;  %s257_s27 = sld [smem:[#allocation3 + %s454_s25]] (!%p204_p8)  ;;  %v279_v0 = vld [vmem:[%s539_s2] sm:$0xff] (!%p204_p8) }
  0x16   : > { %207 = sbr.rel (%p204_p8) target bundleno = 38 (0x26), region = 32  ;;  %s258_s28 = sld [smem:[#allocation4]] (!%p204_p8)  ;;  %vm280_vm0 = vcmp.ne.s32.totalorder (!%p204_p8), %v279_v0, 0 }
  0x1c   : > { %s259_s30 = smul.u32 (!%p204_p8), %s258_s28, %s257_s27 }
  0x1d   : > { %s548_s25 = smov (!%p250_p9, %s454_s25), 1 }
  0x1e   : > { %s396_s29 = sshll.u32 %s548_s25, 3  ;;  %p261_p10 = scmp.lt.s32.totalorder %s259_s30, 1 }
  0x1f   : > { %s256_s8 = scalar_lea.vmem %s540_s3, %s396_s29  ;;  %s278_s17 = scalar_lea.vmem %s542_s5, %s396_s29 }
  0x20   : > { %s550_s30 = smov (!%p261_p10, %s259_s30), 1  ;;  %v282_v1 = vld [vmem:[%s256_s8] sm:$0xff] }
  0x21   : > { %s397_s11 = sshll.u32 %s550_s30, 3 }
  0x22   : > { %s267_s14 = scalar_lea.vmem %s541_s4, %s397_s11 }
  0x23   : > { %v281_v2 = vld [vmem:[%s267_s14] sm:$0xff] }
  0x24   : > { %v283_v3 = vsel %vm280_vm0, %v281_v2, %v282_v1 }
  0x25   : > { %284 = vst [vmem:[%s278_s17] sm:$0xff] %v283_v3 }
  0x26 PF: > { %s22_s26 = sadd.s32 1, %s462_s26   ;;  %s543_s25 = smov %s458_s0 }
  0x27   : > { %p19_p11 = scmp.ge.s32.totalorder %s22_s26, 4   ;;  %s544_s0 = smov %s546_s1 }
  0x29   :  { %21 = sbr.rel (!%p19_p11) target bundleno = 17 (0x11), region = 68 }

</bundles_post_ra>
